<compile_context>
chip_gen: v7x
topology: tpu7x:2x2x1
jax: 0.10.0
libtpu: 0.0.40
codegen_flags: <defaults>
</compile_context>

<pallas_src>
import functools

import jax
import jax.numpy as jnp
from jax import lax
from jax.experimental import pallas as pl
from jax.experimental.pallas import tpu as pltpu

LANE = 128


def _round_up(x, m):
    return (x + m - 1) // m * m


def _sublane(dtype):
    return 16 if jnp.dtype(dtype) == jnp.dtype(jnp.bfloat16) else 8


# ----------------------------------------------------------------------------
# Kernel
# ----------------------------------------------------------------------------
def qnet_kernel(x_ref, w1_ref, b1_ref, w2_ref, b2_ref, w3t_ref, b3_ref,
                out_ref, *, compute_dtype):
    # x tile: (tile_b, S_pad) already in compute_dtype; weights in compute_dtype;
    # biases f32 (elementwise add/ReLU stays f32 -> safe on v5e).
    x = x_ref[...]

    # Layer 1: Linear + ReLU (MXU matmul, f32 accumulate).
    h1 = jnp.dot(x, w1_ref[...], preferred_element_type=jnp.float32)
    h1 = jnp.maximum(h1 + b1_ref[...], 0.0)

    # Layer 2: Linear + ReLU.
    h2 = jnp.dot(h1.astype(compute_dtype), w2_ref[...],
                 preferred_element_type=jnp.float32)
    h2 = jnp.maximum(h2 + b2_ref[...], 0.0)

    # Layer 3 (transposed): contract hidden dim of W3^T (A_pad, H_pad) with the
    # hidden dim of h2 (tile_b, H_pad) -> (A_pad, tile_b).  Batch rides the lane
    # axis, so the store is lane-dense while writing only A_pad rows.
    qt = lax.dot_general(w3t_ref[...], h2.astype(compute_dtype),
                         dimension_numbers=(((1,), (1,)), ((), ())),
                         preferred_element_type=jnp.float32)
    out_ref[...] = (qt + b3_ref[...]).astype(out_ref.dtype)


# ----------------------------------------------------------------------------
# Wrapper
# ----------------------------------------------------------------------------
def qnetwork_forward(x, padded_params, *, action_size, tile_b=2048):
    """x: (B, state_size) f32. padded_params: output of pad_params()."""
    w1, b1 = padded_params["w1"], padded_params["b1"]
    w2, b2 = padded_params["w2"], padded_params["b2"]
    w3t, b3 = padded_params["w3t"], padded_params["b3"]

    compute_dtype = w1.dtype
    sub = _sublane(compute_dtype)

    B, state_size = x.shape
    S_pad, H_pad = w1.shape
    A_pad = w3t.shape[0]

    # ---- batch tiling ------------------------------------------------------
    # Prefer >= 2 grid steps (v7x 2-TensorCore split) once each half can fill a
    # full 128-lane tile of the transposed output.
    if B >= 2 * LANE:
        tile_b = min(tile_b, _round_up(pl.cdiv(B, 2), LANE))
    tile_b = min(tile_b, _round_up(B, sub))
    if tile_b >= B:
        # Single grid step: block dims may equal the (padded) full array dims.
        tile_b = _round_up(B, sub)
        B_pad = tile_b
    else:
        # Multi-step: the transposed-output lane dim (= tile_b) must be a
        # multiple of 128 to satisfy the (8,128) block rule.
        tile_b = _round_up(tile_b, LANE)
        B_pad = _round_up(B, tile_b)
    grid = (B_pad // tile_b,)

    # ---- prepare x (cast once; pad only if actually needed) ----------------
    x_in = x if x.dtype == compute_dtype else x.astype(compute_dtype)
    if B_pad != B or S_pad != state_size:
        x_in = jnp.zeros((B_pad, S_pad), compute_dtype).at[
            :B, :state_size].set(x_in)

    # ---- cost / VMEM sizing -------------------------------------------------
    itemsize = jnp.dtype(compute_dtype).itemsize
    weight_bytes = sum(int(p.size) * p.dtype.itemsize
                       for p in (w1, b1, w2, b2, w3t, b3))
    x_bytes = B_pad * S_pad * itemsize
    out_bytes = A_pad * B_pad * 4
    cost = pl.CostEstimate(
        flops=2 * B_pad * (S_pad * H_pad + H_pad * H_pad + H_pad * A_pad),
        transcendentals=0,
        bytes_accessed=int(x_bytes + weight_bytes + out_bytes),
    )

    x_tile_bytes = tile_b * S_pad * itemsize
    out_tile_bytes = A_pad * tile_b * 4
    act_bytes = 2 * tile_b * H_pad * 4          # h1 / h2 f32 temporaries
    vmem_limit = (2 * weight_bytes + 2 * (x_tile_bytes + out_tile_bytes)
                  + act_bytes + (8 << 20))
    vmem_limit = int(min(max(vmem_limit, 16 << 20), 64 << 20))

    resident = lambda shape: pl.BlockSpec(shape, lambda i: (0, 0))
    kernel = functools.partial(qnet_kernel, compute_dtype=compute_dtype)

    out = pl.pallas_call(
        kernel,
        out_shape=jax.ShapeDtypeStruct((A_pad, B_pad), jnp.float32),
        grid=grid,
        in_specs=[
            pl.BlockSpec((tile_b, S_pad), lambda i: (i, 0)),   # x: batch-tiled
            resident(w1.shape), resident(b1.shape),            # weights resident
            resident(w2.shape), resident(b2.shape),
            resident(w3t.shape), resident(b3.shape),
        ],
        out_specs=pl.BlockSpec((A_pad, tile_b), lambda i: (0, i)),
        compiler_params=pltpu.CompilerParams(
            dimension_semantics=("parallel",),     # megacore split on v7x
            vmem_limit_bytes=vmem_limit,
        ),
        cost_estimate=cost,
    )(x_in, w1, b1, w2, b2, w3t, b3)

    # Slice off padding and transpose back to (B, action_size).
    return out[:action_size, :B].T


# ----------------------------------------------------------------------------
# Parameter helpers
# ----------------------------------------------------------------------------
def init_params(key, state_size, hidden_size, action_size):
    """PyTorch-style uniform init; weights stored as (in_features, out_features)."""
    ks = jax.random.split(key, 6)

    def lin(kw, kb, fan_in, fan_out):
        bound = 1.0 / jnp.sqrt(fan_in)
        w = jax.random.uniform(kw, (fan_in, fan_out), jnp.float32, -bound, bound)
        b = jax.random.uniform(kb, (1, fan_out), jnp.float32, -bound, bound)
        return w, b

    w1, b1 = lin(ks[0], ks[1], state_size, hidden_size)
    w2, b2 = lin(ks[2], ks[3], hidden_size, hidden_size)
    w3, b3 = lin(ks[4], ks[5], hidden_size, action_size)
    return {"w1": w1, "b1": b1, "w2": w2, "b2": b2, "w3": w3, "b3": b3}


def pad_params(params, *, compute_dtype=jnp.float32):
    """Pad: hidden dim -> 128 lanes; state/action dims only to the dtype
    sublane multiple.  w3 is stored transposed (A_pad, H_pad).  Weights cast to
    compute_dtype (bf16 recommended on v5e); biases kept f32."""
    sub = _sublane(compute_dtype)
    state_size, hidden_size = params["w1"].shape
    action_size = params["w3"].shape[1]
    S_pad = _round_up(state_size, sub)
    H_pad = _round_up(hidden_size, LANE)
    A_pad = _round_up(action_size, sub)

    def pad2(a, rows, cols):
        out = jnp.zeros((rows, cols), compute_dtype)
        return out.at[:a.shape[0], :a.shape[1]].set(a.astype(compute_dtype))

    def pad_brow(b, cols):   # (1, cols) f32
        out = jnp.zeros((1, cols), jnp.float32)
        return out.at[:, :b.shape[-1]].set(b.reshape(1, -1).astype(jnp.float32))

    b3_col = params["b3"].reshape(-1, 1).astype(jnp.float32)       # (A, 1)
    b3_pad = jnp.zeros((A_pad, 1), jnp.float32).at[:action_size, :].set(b3_col)

    return {
        "w1": pad2(params["w1"], S_pad, H_pad), "b1": pad_brow(params["b1"], H_pad),
        "w2": pad2(params["w2"], H_pad, H_pad), "b2": pad_brow(params["b2"], H_pad),
        "w3t": pad2(params["w3"].T, A_pad, H_pad), "b3": b3_pad,
    }


# ----------------------------------------------------------------------------
# Demo / correctness check
# ----------------------------------------------------------------------------
if __name__ == "__main__":
    key = jax.random.PRNGKey(0)
    k_x, k_p = jax.random.split(key)

    batch = 8
    state_size = 16
    hidden_size = 32
    action_size = 4

    x = jax.random.normal(k_x, (batch, state_size), dtype=jnp.float32)
    params = init_params(k_p, state_size, hidden_size, action_size)

    # Pure-JAX f32 reference of the same forward pass.
    h1 = jnp.maximum(x @ params["w1"] + params["b1"], 0.0)
    h2 = jnp.maximum(h1 @ params["w2"] + params["b2"], 0.0)
    q_ref = h2 @ params["w3"] + params["b3"]

    # f32 path: exact match expected.
    p_f32 = pad_params(params, compute_dtype=jnp.float32)
    q_f32 = qnetwork_forward(x, p_f32, action_size=action_size)
    q_f32 = jax.block_until_ready(q_f32)
    assert q_f32.shape == (batch, action_size)
    assert jnp.allclose(q_f32, q_ref, atol=1e-5, rtol=1e-5)

    # bf16 matmul path (f32 accumulate): loose tolerance.  Recommended on v5e.
    p_bf16 = pad_params(params, compute_dtype=jnp.bfloat16)
    q_bf16 = qnetwork_forward(x, p_bf16, action_size=action_size)
    q_bf16 = jax.block_until_ready(q_bf16)
    assert q_bf16.shape == (batch, action_size)
    assert jnp.allclose(q_bf16, q_ref, atol=3e-2, rtol=3e-2)

    print("KERNEL_OK")
</pallas_src>

<mosaic_0001>
module attributes {stable_mosaic.version = 11 : i64} {
  func.func @qnet_kernel(%arg0: i32, %arg1: memref<8x16xf32, #tpu.memory_space<vmem>>, %arg2: memref<16x128xf32, #tpu.memory_space<vmem>>, %arg3: memref<1x128xf32, #tpu.memory_space<vmem>>, %arg4: memref<128x128xf32, #tpu.memory_space<vmem>>, %arg5: memref<1x128xf32, #tpu.memory_space<vmem>>, %arg6: memref<8x128xf32, #tpu.memory_space<vmem>>, %arg7: memref<8x1xf32, #tpu.memory_space<vmem>>, %arg8: memref<8x8xf32, #tpu.memory_space<vmem>>) attributes {dimension_semantics = [#tpu.dimension_semantics<parallel>], iteration_bounds = array<i64: 1>, scalar_prefetch = 0 : i64, scratch_operands = 0 : i64, tpu.core_type = #tpu.core_type<tc>, window_params = [{transform_indices = @transform_0, window_bounds = array<i64: 8, 16>}, {pipeline_mode = #tpu.pipeline_mode<synchronous>, transform_indices = @transform_1, window_bounds = array<i64: 16, 128>}, {pipeline_mode = #tpu.pipeline_mode<synchronous>, transform_indices = @transform_2, window_bounds = array<i64: 1, 128>}, {pipeline_mode = #tpu.pipeline_mode<synchronous>, transform_indices = @transform_3, window_bounds = array<i64: 128, 128>}, {pipeline_mode = #tpu.pipeline_mode<synchronous>, transform_indices = @transform_4, window_bounds = array<i64: 1, 128>}, {pipeline_mode = #tpu.pipeline_mode<synchronous>, transform_indices = @transform_5, window_bounds = array<i64: 8, 128>}, {pipeline_mode = #tpu.pipeline_mode<synchronous>, transform_indices = @transform_6, window_bounds = array<i64: 8, 1>}, {transform_indices = @transform_7, window_bounds = array<i64: 8, 8>}]} {
    %c0 = arith.constant 0 : index
    %c0_0 = arith.constant 0 : index
    %0 = vector.load %arg1[%c0, %c0_0] : memref<8x16xf32, #tpu.memory_space<vmem>>, vector<8x16xf32>
    %c0_1 = arith.constant 0 : index
    %c0_2 = arith.constant 0 : index
    %1 = vector.load %arg2[%c0_1, %c0_2] : memref<16x128xf32, #tpu.memory_space<vmem>>, vector<16x128xf32>
    %cst = arith.constant dense<0.000000e+00> : vector<8x128xf32>
    %2 = tpu.matmul %0, %1, %cst {dimension_numbers = #tpu.dot_dimension_numbers<[1], [0], [0], [1], [0, 0, 1, 1], [], []>} : vector<8x16xf32>, vector<16x128xf32>, vector<8x128xf32> -> vector<8x128xf32>
    %c0_3 = arith.constant 0 : index
    %c0_4 = arith.constant 0 : index
    %3 = vector.load %arg3[%c0_3, %c0_4] : memref<1x128xf32, #tpu.memory_space<vmem>>, vector<1x128xf32>
    %4 = vector.broadcast %3 : vector<1x128xf32> to vector<8x128xf32>
    %5 = arith.addf %2, %4 : vector<8x128xf32>
    %cst_5 = arith.constant 0.000000e+00 : f32
    %6 = vector.broadcast %cst_5 : f32 to vector<8x128xf32>
    %7 = arith.maximumf %5, %6 : vector<8x128xf32>
    %c0_6 = arith.constant 0 : index
    %c0_7 = arith.constant 0 : index
    %8 = vector.load %arg4[%c0_6, %c0_7] : memref<128x128xf32, #tpu.memory_space<vmem>>, vector<128x128xf32>
    %cst_8 = arith.constant dense<0.000000e+00> : vector<8x128xf32>
    %9 = tpu.matmul %7, %8, %cst_8 {dimension_numbers = #tpu.dot_dimension_numbers<[1], [0], [0], [1], [0, 0, 1, 1], [], []>} : vector<8x128xf32>, vector<128x128xf32>, vector<8x128xf32> -> vector<8x128xf32>
    %c0_9 = arith.constant 0 : index
    %c0_10 = arith.constant 0 : index
    %10 = vector.load %arg5[%c0_9, %c0_10] : memref<1x128xf32, #tpu.memory_space<vmem>>, vector<1x128xf32>
    %11 = vector.broadcast %10 : vector<1x128xf32> to vector<8x128xf32>
    %12 = arith.addf %9, %11 : vector<8x128xf32>
    %cst_11 = arith.constant 0.000000e+00 : f32
    %13 = vector.broadcast %cst_11 : f32 to vector<8x128xf32>
    %14 = arith.maximumf %12, %13 : vector<8x128xf32>
    %c0_12 = arith.constant 0 : index
    %c0_13 = arith.constant 0 : index
    %15 = vector.load %arg6[%c0_12, %c0_13] : memref<8x128xf32, #tpu.memory_space<vmem>>, vector<8x128xf32>
    %cst_14 = arith.constant dense<0.000000e+00> : vector<8x8xf32>
    %16 = tpu.matmul %15, %14, %cst_14 {dimension_numbers = #tpu.dot_dimension_numbers<[1], [1], [0], [0], [0, 0, 1, 0], [], []>} : vector<8x128xf32>, vector<8x128xf32>, vector<8x8xf32> -> vector<8x8xf32>
    %c0_15 = arith.constant 0 : index
    %c0_16 = arith.constant 0 : index
    %17 = vector.load %arg7[%c0_15, %c0_16] : memref<8x1xf32, #tpu.memory_space<vmem>>, vector<8x1xf32>
    %18 = vector.broadcast %17 : vector<8x1xf32> to vector<8x8xf32>
    %19 = arith.addf %16, %18 : vector<8x8xf32>
    %c0_17 = arith.constant 0 : index
    %c0_18 = arith.constant 0 : index
    %20 = vector.load %arg8[%c0_17, %c0_18] : memref<8x8xf32, #tpu.memory_space<vmem>>, vector<8x8xf32>
    tpu.vector_store %arg8[%c0_17, %c0_18], %19 {strides = array<i32>} : memref<8x8xf32, #tpu.memory_space<vmem>>, vector<8x8xf32>,
    return
  }
  func.func @transform_0(%arg0: i32) -> (i32, i32) {
    %c0_i32 = arith.constant 0 : i32
    %c0_i32_0 = arith.constant 0 : i32
    return %arg0, %c0_i32 : i32, i32
  }
  func.func @transform_1(%arg0: i32) -> (i32, i32) {
    %c0_i32 = arith.constant 0 : i32
    %c0_i32_0 = arith.constant 0 : i32
    %c0_i32_1 = arith.constant 0 : i32
    return %c0_i32, %c0_i32_0 : i32, i32
  }
  func.func @transform_2(%arg0: i32) -> (i32, i32) {
    %c0_i32 = arith.constant 0 : i32
    %c0_i32_0 = arith.constant 0 : i32
    %c0_i32_1 = arith.constant 0 : i32
    return %c0_i32, %c0_i32_0 : i32, i32
  }
  func.func @transform_3(%arg0: i32) -> (i32, i32) {
    %c0_i32 = arith.constant 0 : i32
    %c0_i32_0 = arith.constant 0 : i32
    %c0_i32_1 = arith.constant 0 : i32
    return %c0_i32, %c0_i32_0 : i32, i32
  }
  func.func @transform_4(%arg0: i32) -> (i32, i32) {
    %c0_i32 = arith.constant 0 : i32
    %c0_i32_0 = arith.constant 0 : i32
    %c0_i32_1 = arith.constant 0 : i32
    return %c0_i32, %c0_i32_0 : i32, i32
  }
  func.func @transform_5(%arg0: i32) -> (i32, i32) {
    %c0_i32 = arith.constant 0 : i32
    %c0_i32_0 = arith.constant 0 : i32
    %c0_i32_1 = arith.constant 0 : i32
    return %c0_i32, %c0_i32_0 : i32, i32
  }
  func.func @transform_6(%arg0: i32) -> (i32, i32) {
    %c0_i32 = arith.constant 0 : i32
    %c0_i32_0 = arith.constant 0 : i32
    %c0_i32_1 = arith.constant 0 : i32
    return %c0_i32, %c0_i32_0 : i32, i32
  }
  func.func @transform_7(%arg0: i32) -> (i32, i32) {
    %c0_i32 = arith.constant 0 : i32
    %c0_i32_0 = arith.constant 0 : i32
    return %c0_i32, %arg0 : i32, i32
  }
}

</mosaic_0001>

<bundles_post_ra>
// kernel: tpu_custom_call.1
= control target key start
LH: loop header
LB: loop body
LE: loop exit
PB: predicated region body
PF: predicated region fallthrough
CT: control target
= control target key end

     0   :  { %12 = vsyncpa [#allocation3], 0  ;;  %s664_s0 = inlined_call_operand.vmem [shape: f32[8,16], index: 0, kind: input, shape index: {}]   ;;  %s665_s1 = inlined_call_operand.hbm [shape: f32[16,128], index: 1, kind: input, shape index: {}]   ;;  %s666_s2 = inlined_call_operand.hbm [shape: f32[1,128], index: 2, kind: input, shape index: {}]   ;;  %s667_s3 = inlined_call_operand.hbm [shape: f32[128,128], index: 3, kind: input, shape index: {}]   ;;  %s668_s4 = inlined_call_operand.vmem [shape: f32[1,128], index: 4, kind: input, shape index: {}]   ;;  %s669_s5 = inlined_call_operand.vmem [shape: f32[8,128], index: 5, kind: input, shape index: {}]   ;;  %s670_s6 = inlined_call_operand.vmem [shape: f32[8,1], index: 6, kind: input, shape index: {}]   ;;  %s671_s7 = inlined_call_operand.hbm [shape: f32[8,8], index: 7, kind: output, shape index: {}]  }
   0x1   :  { %13 = vsyncpa [#allocation6], 0 }
   0x2   :  { %14 = vsyncpa [#allocation4], 0  ;;  %s544_s24 = smov [#allocation5]   ;;  %s545_s26 = smov [#allocation2]  }
   0x3   :  { %s35_s25 = sshll.u32 %s544_s24, 4  ;;  %s22_s27 = sshll.u32 %s545_s26, 4  ;;  %s36_s25 = int_to_ptr.vmem [resolvable:$true] %s35_s25  ;;  %s594_s27 = int_to_ptr.vmem [resolvable:$true] %s22_s27 }
   0x4   :  { %s450_s30 = scalar_lea.hbm %s666_s2, 16 }
   0x5   :  { %p451_p0 = scmp.ne.s32.totalorder %s666_s2, %s450_s30  ;;  %p454_p1 = scmp.lt.u32.totalorder %s450_s30, %s666_s2 }
   0x7   :  { %p456_p2 = pnand %p454_p1, %p451_p0 }
   0x9   :  { %459 = shalt.err (!%p456_p2)
}
   0xa   :  { %s460_s12 = scalar_lea.vmem %s36_s25, 16  ;;  %s464_s13 = scalar_lea.vmem %s36_s25, 32 }
   0xb   :  { %p461_p3 = scmp.ne.s32.totalorder %s36_s25, %s460_s12  ;;  %p465_p4 = scmp.lt.s32.totalorder %s36_s25, %s36_s25 }
   0xc   :  { %p466_p5 = scmp.lt.s32.totalorder %s464_s13, %s460_s12 }
   0xe   :  { %p467_p6 = por %p466_p5, %p465_p4 }
  0x10   :  { %p468_p7 = pnand %p467_p6, %p461_p3 }
  0x12   :  { %471 = shalt.err (!%p468_p7)
}
  0x13   :  { %38 = dma.hbm_to_vmem [thread:$0]  %s666_s2, 16, %s36_s25, [#allocation6]  }
  0x14   :  { %s472_s18 = scalar_lea.hbm %s665_s1, 256 }
  0x15   :  { %p473_p8 = scmp.ne.s32.totalorder %s665_s1, %s472_s18  ;;  %p476_p9 = scmp.lt.u32.totalorder %s472_s18, %s665_s1 }
  0x17   :  { %p478_p10 = pnand %p476_p9, %p473_p8 }
  0x19   :  { %481 = shalt.err (!%p478_p10)
}
  0x1a   :  { %s482_s23 = scalar_lea.vmem %s594_s27, 256  ;;  %p487_p12 = scmp.lt.s32.totalorder %s594_s27, %s594_s27 }
  0x1b   :  { %p483_p11 = scmp.ne.s32.totalorder %s594_s27, %s482_s23  ;;  %p488_p13 = scmp.lt.s32.totalorder %s482_s23, %s482_s23 }
  0x1d   :  { %p489_p0 = por %p488_p13, %p487_p12 }
  0x1f   :  { %p490_p1 = pnand %p489_p0, %p483_p11 }
  0x21   :  { %493 = shalt.err (!%p490_p1)
}
  0x22   :  { %s546_s2 = smov 128   ;;  %s547_s24 = smov 8  }
  0x23   :  { %28 = dma.hbm_to_vmem [thread:$0]  %s665_s1, 256, %s594_s27, [#allocation3], %s546_s2, %s546_s2, %s547_s24  }
  0x24   :  { %s548_s28 = smov [#allocation7]   ;;  %s494_s9 = scalar_lea.hbm %s667_s3, 2048 }
  0x25   :  { %s44_s29 = sshll.u32 %s548_s28, 4  ;;  %p495_p2 = scmp.ne.s32.totalorder %s667_s3, %s494_s9  ;;  %s45_s29 = int_to_ptr.vmem [resolvable:$true] %s44_s29 }
  0x26   :  { %p498_p3 = scmp.lt.u32.totalorder %s494_s9, %s667_s3 }
  0x28   :  { %p500_p4 = pnand %p498_p3, %p495_p2 }
  0x2a   :  { %503 = shalt.err (!%p500_p4)
}
  0x2b   :  { %s504_s14 = scalar_lea.vmem %s45_s29, 2048  ;;  %p509_p6 = scmp.lt.s32.totalorder %s45_s29, %s45_s29 }
  0x2c   :  { %p505_p5 = scmp.ne.s32.totalorder %s45_s29, %s504_s14  ;;  %p510_p7 = scmp.lt.s32.totalorder %s504_s14, %s504_s14 }
  0x2e   :  { %p511_p8 = por %p510_p7, %p509_p6 }
  0x30   :  { %p512_p9 = pnand %p511_p8, %p505_p5 }
  0x32   :  { %515 = shalt.err (!%p512_p9)
}
  0x33   :  { %50 = dma.hbm_to_vmem [thread:$0]  %s667_s3, 2048, %s45_s29, [#allocation6], %s546_s2, %s546_s2, %s547_s24  }
  0x34   :  { %538 = dma.done.wait [#allocation3], 256  }
  0x35   :  { %539 = vsyncadd [#allocation3], 4294967040 }
  0x36   :  { %540 = dma.done.wait [#allocation6], 2064  }
  0x37   :  { %541 = vsyncadd [#allocation6], 4294965232  ;;  %v549_v0 = vmov 0.0|0.0   ;;  %vm550_vm0 = vmmov 0   ;;  %v551_v1 = vmov 0.0   ;;  %v67_v2 = vld [vmem:[#allocation2] sm:$0xff] }
  0x38   :  { %412 = vmatprep.subr.bf16.mxu0 %v549_v0  ;;  %369 = vmatprep.mubr.msk.f32.mxu0 %vm550_vm0, %v551_v1  ;;  %v68_v3 = vld [vmem:[#allocation2 + $0x8] sm:$0xff]  ;;  %v151_v5 = vld [vmem:[#allocation7] sm:$0xff]  ;;  %v152_v6 = vld [vmem:[#allocation7 + $0x8] sm:$0xff]  ;;  %vm76_vm1 = vcmask 130048   ;;  %v552_v36 = vmov 0   ;;  %s553_s21 = smov [#allocation8]  }
  0x39   :  { %415 = vmatprep.subr.bf16.mxu1 %v549_v0  ;;  %404 = vmatprep.mubr.msk.f32.mxu1 %vm550_vm0, %v551_v1  ;;  %v413_v4 = vpack.c.bf16 %v68_v3, %v67_v2  ;;  %v153_v7 = vld [vmem:[#allocation7 + $0x10] sm:$0xff]  ;;  %v416_v8 = vpack.c.bf16 %v152_v6, %v151_v5  ;;  %v154_v9 = vld [vmem:[#allocation7 + $0x18] sm:$0xff]  ;;  %v155_v12 = vld [vmem:[#allocation7 + $0x20] sm:$0xff]  ;;  %vm322_vm2 = vcmask 64512  }
  0x3a   :  { %v66_v10 = vld [vmem:[%s664_s0] sm:$0xff]  ;;  %v419_v11 = vpack.c.bf16 %v154_v9, %v153_v7  ;;  %v158_v16 = vld [vmem:[#allocation7 + $0x38] sm:$0xff]  ;;  %v159_v18 = vld [vmem:[#allocation7 + $0x40] sm:$0xff]  ;;  %449 = vset.pattern.permute.xlu0 %v552_v36 }
  0x3b   :  { %414 = vmatpush3.bf16.msra.mxu0 %v413_v4  ;;  %417 = vmatpush3.bf16.msra.mxu1 %v416_v8  ;;  %v156_v13 = vld [vmem:[#allocation7 + $0x28] sm:$0xff]  ;;  %v157_v15 = vld [vmem:[#allocation7 + $0x30] sm:$0xff]  ;;  %v162_v22 = vld [vmem:[#allocation7 + $0x58] sm:$0xff] }
  0x3c   :  { %407 = vmatprep.subr.mxu0 %v551_v1  ;;  %418 = vmatprep.subr.bf16.mxu1 %v549_v0  ;;  %v422_v14 = vpack.c.bf16 %v156_v13, %v155_v12  ;;  %v425_v17 = vpack.c.bf16 %v158_v16, %v157_v15  ;;  %v160_v19 = vld [vmem:[#allocation7 + $0x48] sm:$0xff]  ;;  %v161_v21 = vld [vmem:[#allocation7 + $0x50] sm:$0xff]  ;;  %v163_v24 = vld [vmem:[#allocation7 + $0x60] sm:$0xff] }
  0x3d   :  { %v428_v20 = vpack.c.bf16 %v160_v19, %v159_v18  ;;  %v431_v23 = vpack.c.bf16 %v162_v22, %v161_v21  ;;  %v164_v25 = vld [vmem:[#allocation7 + $0x68] sm:$0xff]  ;;  %v165_v27 = vld [vmem:[#allocation7 + $0x70] sm:$0xff]  ;;  %v166_v28 = vld [vmem:[#allocation7 + $0x78] sm:$0xff] }
  0x3e   :  { %370 = vmatmul.mubr.msk.f32.vlgmr.msra.gmra.mrb[0].mxu0 %vm76_vm1, %v66_v10  ;;  %v434_v26 = vpack.c.bf16 %v164_v25, %v163_v24  ;;  %v437_v29 = vpack.c.bf16 %v166_v28, %v165_v27  ;;  %v340_v30 = vld [vmem:[#allocation5] ss:$0 sm:$0xff]  ;;  %v246_v35 = vld [vmem:[%s670_s6] sm:$0xff]  ;;  %s330_s6 = sshll.u32 %s553_s21, 4  ;;  %s331_s6 = int_to_ptr.vmem [resolvable:$true] %s330_s6 }
  0x3f   :  { %409 = vmatprep.mubr.msk.f32.mxu0 %vm550_vm0, %v551_v1  ;;  %420 = vmatpush3.bf16.msra.mxu1 %v419_v11  ;;  %v342_v37 = vld [vmem:[%s668_s4] ss:$0 sm:$0xff]  ;;  %s516_s4 = scalar_lea.vmem %s331_s6, 128  ;;  %p521_p11 = scmp.lt.s32.totalorder %s331_s6, %s331_s6 }
  0x40   :  { %421 = vmatprep.subr.bf16.mxu1 %v549_v0  ;;  %249 = vperm.xlu0 %449, %v246_v35   ;;  %v245_v42 = vld [vmem:[%s669_s5] sm:$0xff]  ;;  %p517_p10 = scmp.ne.s32.totalorder %s331_s6, %s516_s4  ;;  %p522_p12 = scmp.lt.s32.totalorder %s516_s4, %s516_s4 }
  0x42   :  { %p523_p13 = por %p522_p12, %p521_p11 }
  0x43   :  { %423 = vmatpush3.bf16.msra.mxu1 %v422_v14 }
  0x44   :  { %424 = vmatprep.subr.bf16.mxu1 %v549_v0  ;;  %p524_p0 = pnand %p523_p13, %p517_p10 }
  0x47   :  { %426 = vmatpush3.bf16.msra.mxu1 %v425_v17 }
  0x48   :  { %427 = vmatprep.subr.bf16.mxu1 %v549_v0 }
  0x4b   :  { %429 = vmatpush3.bf16.msra.mxu1 %v428_v20 }
  0x4c   :  { %430 = vmatprep.subr.bf16.mxu1 %v549_v0 }
  0x4f   :  { %432 = vmatpush3.bf16.msra.mxu1 %v431_v23 }
  0x50   :  { %433 = vmatprep.subr.bf16.mxu1 %v549_v0 }
  0x53   :  { %435 = vmatpush3.bf16.msra.mxu1 %v434_v26 }
  0x54   :  { %436 = vmatprep.subr.bf16.mxu1 %v549_v0 }
  0x57   :  { %438 = vmatpush3.bf16.msra.mxu1 %v437_v29 }
  0xbf   :  { %v250_v43 = vpop.permute.xlu0 %249 }
 0x111   :  { %v146_v31 = vpop.f32.mrb[0].mxu0 }
 0x112   :  { %v147_v32 = vadd.f32 %v340_v30, %v146_v31  ;;  %v371_v33 = vpop.f32.mrb[1].mxu0 }
 0x114   :  { %v150_v34 = vmax.f32 %v147_v32, 0.0 }
 0x116   :  { %405 = vmatmul.mubr.f32.vlgmr.msra.gmra.mrb[0].mxu1 %v150_v34 }
 0x1e9   :  { %v240_v38 = vpop.f32.mrb[0].mxu1 }
 0x1ea   :  { %v241_v39 = vadd.f32 %v342_v37, %v240_v38  ;;  %v406_v40 = vpop.f32.mrb[1].mxu1 }
 0x1ec   :  { %v244_v41 = vmax.f32 %v241_v39, 0.0 }
 0x1ee   :  { %408 = vmatpush3.xpose.msra.mxu0 %v244_v41 }
 0x1f1   :  { %410 = vmatmul.mubr.f32.vlgmr.msra.gmra.mrb[2].mxu0 %v245_v42 }
 0x2c4   :  { %v318_v44 = vpop.f32.mrb[2].mxu0 }
 0x2c5   :  { %v319_v45 = vadd.f32 %v318_v44, %v250_v43  ;;  %v411_v46 = vpop.f32.mrb[3].mxu0 }
 0x2c7   :  { %323 = vst.msk [vmem:[#allocation8] sm:$0xff] %vm322_vm2, %v319_v45 }
 0x2c8   :  { %527 = shalt.err (!%p524_p0)
}
 0x2c9   :  { %s528_s5 = scalar_lea.hbm %s671_s7, 128 }
 0x2ca   :  { %p529_p1 = scmp.ne.s32.totalorder %s671_s7, %s528_s5  ;;  %p532_p2 = scmp.lt.u32.totalorder %s528_s5, %s671_s7 }
 0x2cc   :  { %p534_p3 = pnand %p532_p2, %p529_p1 }
 0x2ce   :  { %537 = shalt.err (!%p534_p3)
}
 0x2cf   :  { %333 = dma.vmem_to_hbm [thread:$0]  %s331_s6, 128, %s671_s7, [#allocation4]  }
 0x2d0   :  { %542 = dma.done.wait [#allocation4], 128  }
 0x2d1   :  { %543 = vsyncadd [#allocation4], 4294967168 }
 0x2d2   :  { %337 = vsyncpa [#allocation3], 1 }
 0x2d3   :  { %338 = vsyncpa [#allocation6], 1 }
 0x2d4   :  { %339 = vsyncpa [#allocation4], 1 }

</bundles_post_ra>
